<compile_context>
chip_gen: v7x
topology: tpu7x:2x2x1
jax: 0.10.0
libtpu: 0.0.40
codegen_flags: <defaults>
</compile_context>

<pallas_src>
import functools

import jax
import jax.numpy as jnp
from jax.experimental import pallas as pl
from jax.experimental.pallas import tpu as pltpu


def _attention_kernel(x_ref, wqkv_ref, bqkv_ref, wproj_ref, bproj_ref, o_ref,
                      qkv_scratch, cat_scratch, *,
                      num_heads, head_dim, seq_padded, seq_valid, batch_tile,
                      heads_per_group):
    # x_ref:       (1, rows, C)   row-batched activations, rows = bt * N_pad
    # wqkv_ref:    (C, 3C)        qkv weight (pre-transposed, q-cols pre-scaled)
    # bqkv_ref:    (1, 3C) f32    qkv bias (q part pre-scaled)
    # wproj_ref:   (C, C)         proj weight (pre-transposed)
    # bproj_ref:   (1, C)  f32    proj bias
    # o_ref:       (1, rows, C)
    # qkv_scratch: (rows, 3C)     staged QKV projection (x.dtype)
    # cat_scratch: (rows, C)      concatenated head outputs (x.dtype)
    n = seq_padded
    bt = batch_tile
    hd = head_dim
    c = num_heads * hd
    gd = heads_per_group * hd

    x2d = x_ref[0]                                             # (rows, C)

    # Single QKV projection on the MXU.  The qkv bias is folded into the same
    # staging store (no extra full-slab pass); q is already pre-scaled.
    qkv = jnp.dot(x2d, wqkv_ref[...], preferred_element_type=jnp.float32)
    qkv_scratch[...] = (qkv + bqkv_ref[...]).astype(qkv_scratch.dtype)

    # Additive key mask for padded sequence positions, built once and shared by
    # every head (skipped entirely when no padding was needed).
    if seq_valid != seq_padded:
        kidx = jax.lax.broadcasted_iota(jnp.int32, (1, n), 1)
        key_mask = jnp.where(kidx < seq_valid, 0.0, -1e30).astype(jnp.float32)
        key_mask = key_mask.reshape(1, 1, n)
    else:
        key_mask = None

    num_groups = num_heads // heads_per_group
    for g in range(num_groups):
        off = g * gd
        # One 128-lane-aligned slab load per q/k/v per head group (pair for
        # hd=64); the per-head split happens in-register.
        q_blk = qkv_scratch[:, off:off + gd].reshape(bt, n, gd)
        k_blk = qkv_scratch[:, c + off:c + off + gd].reshape(bt, n, gd)
        v_blk = qkv_scratch[:, 2 * c + off:2 * c + off + gd].reshape(bt, n, gd)

        outs = []
        for hh in range(heads_per_group):
            lo = hh * hd
            q = q_blk[:, :, lo:lo + hd]
            k = k_blk[:, :, lo:lo + hd]
            v = v_blk[:, :, lo:lo + hd]

            # logits = (q * scale) @ k^T — scale already folded into q.
            logits = jnp.einsum("bqd,bkd->bqk", q, k,
                                preferred_element_type=jnp.float32)
            if key_mask is not None:
                logits = logits + key_mask
            m = jnp.max(logits, axis=-1, keepdims=True)
            p = jnp.exp(logits - m)
            denom = jnp.sum(p, axis=-1, keepdims=True)
            attn = p * pl.reciprocal(denom, approx=True)       # EUP slot, f32
            out_h = jnp.einsum("bqk,bkd->bqd", attn.astype(v.dtype), v,
                               preferred_element_type=jnp.float32)
            outs.append(out_h.astype(cat_scratch.dtype))

        out_g = outs[0] if len(outs) == 1 else jnp.concatenate(outs, axis=-1)
        # 128-lane-aligned store of the concatenated head-group result.
        cat_scratch[:, off:off + gd] = out_g.reshape(bt * n, gd)

    # Single full-depth output projection; bias folded into its epilogue.
    y = jnp.dot(cat_scratch[...], wproj_ref[...],
                preferred_element_type=jnp.float32)
    y = y + bproj_ref[...]
    o_ref[0] = y.astype(o_ref.dtype)


def _largest_divisor_leq(batch, bt):
    bt = max(1, min(batch, bt))
    while batch % bt != 0:
        bt -= 1
    return bt


def _heads_per_group(num_heads, head_dim):
    """Heads per 128-lane-aligned slab (pairs for hd=64)."""
    if head_dim >= 128:
        return 1
    return _largest_divisor_leq(num_heads, max(1, 128 // head_dim))


def _vmem_need_bytes(rows, c, itemsize):
    """Conservative VMEM footprint estimate for one grid step."""
    weights = (c * 3 * c + c * c) * itemsize          # resident weight blocks
    biases = (3 * c + c) * 4
    io = 2 * rows * c * itemsize                      # in tile + out tile
    scratch = rows * 3 * c * itemsize + rows * c * itemsize
    need = 2 * (weights + biases + io) + scratch      # 2x: double buffering
    return int(need * 1.25) + (4 << 20)               # headroom


def _pick_batch_tile(batch, seq_len, channels, itemsize,
                     target_rows=512, vmem_soft_cap=None):
    bt = _largest_divisor_leq(batch, max(1, target_rows // max(seq_len, 1)))
    # Keep >= 2 grid steps so both v7x TensorCores get work.
    if batch >= 2:
        while batch // bt < 2:
            bt = _largest_divisor_leq(batch, max(1, bt // 2))
    # Shrink until the VMEM budget fits.
    if vmem_soft_cap is not None:
        while bt > 1 and _vmem_need_bytes(bt * seq_len, channels,
                                          itemsize) > vmem_soft_cap:
            bt = _largest_divisor_leq(batch, max(1, bt // 2))
    return bt


def attention_forward(x, wqkv, bqkv, wproj, bproj, *, num_heads,
                      qk_scale=None, batch_tile=None, target_rows=512):
    """ViT Attention forward.

    x:     (B, N, C)
    wqkv:  (3C, C)  torch (out, in) layout
    bqkv:  (3C,) or None
    wproj: (C, C)   torch (out, in) layout
    bproj: (C,)
    """
    B, N, C = x.shape
    assert C % num_heads == 0
    hd = C // num_heads
    scale = qk_scale if qk_scale is not None else hd ** (-0.5)

    wqkv_t = jnp.asarray(wqkv).T.astype(x.dtype)          # (C, 3C)
    wproj_t = jnp.asarray(wproj).T.astype(x.dtype)        # (C, C)
    bqkv_f = (jnp.zeros((3 * C,), jnp.float32) if bqkv is None
              else jnp.asarray(bqkv, jnp.float32))
    bproj_f = jnp.asarray(bproj, jnp.float32)

    # Fold the softmax scale into q (weight columns + bias) — zero kernel cost.
    col_scale_w = jnp.concatenate(
        [jnp.full((C,), scale, wqkv_t.dtype), jnp.ones((2 * C,), wqkv_t.dtype)])
    col_scale_b = jnp.concatenate(
        [jnp.full((C,), scale, jnp.float32), jnp.ones((2 * C,), jnp.float32)])
    wqkv_t = wqkv_t * col_scale_w[None, :]
    bqkv_f = bqkv_f * col_scale_b

    # Pad the sequence to a sublane multiple; padded keys are masked in-kernel.
    n_pad = -(-N // 8) * 8
    x_p = jnp.pad(x, ((0, 0), (0, n_pad - N), (0, 0))) if n_pad != N else x

    itemsize = jnp.dtype(x.dtype).itemsize
    try:
        vmem_cap = int(pltpu.get_tpu_info().vmem_capacity_bytes)
    except Exception:
        vmem_cap = 64 * 1024 * 1024                      # safe for all gens
    vmem_soft_cap = int(vmem_cap * 0.9)

    bt = (batch_tile if batch_tile is not None
          else _pick_batch_tile(B, n_pad, C, itemsize,
                                target_rows=target_rows,
                                vmem_soft_cap=vmem_soft_cap))
    assert B % bt == 0
    num_tiles = B // bt
    rows = bt * n_pad
    x_tiled = x_p.reshape(num_tiles, rows, C)

    vmem_limit = min(max(_vmem_need_bytes(rows, C, itemsize), 32 << 20),
                     vmem_soft_cap)

    hpg = _heads_per_group(num_heads, hd)
    kernel = functools.partial(
        _attention_kernel, num_heads=num_heads, head_dim=hd,
        seq_padded=n_pad, seq_valid=N, batch_tile=bt, heads_per_group=hpg)

    out = pl.pallas_call(
        kernel,
        out_shape=jax.ShapeDtypeStruct((num_tiles, rows, C), x.dtype),
        grid_spec=pltpu.PrefetchScalarGridSpec(
            num_scalar_prefetch=0,
            grid=(num_tiles,),
            in_specs=[
                pl.BlockSpec((1, rows, C), lambda b: (b, 0, 0)),
                # Constant index_maps: weights/biases stay VMEM-resident.
                pl.BlockSpec((C, 3 * C), lambda b: (0, 0)),
                pl.BlockSpec((1, 3 * C), lambda b: (0, 0)),
                pl.BlockSpec((C, C), lambda b: (0, 0)),
                pl.BlockSpec((1, C), lambda b: (0, 0)),
            ],
            out_specs=pl.BlockSpec((1, rows, C), lambda b: (b, 0, 0)),
            scratch_shapes=[
                pltpu.VMEM((rows, 3 * C), x.dtype),      # staged QKV
                pltpu.VMEM((rows, C), x.dtype),          # concatenated heads
            ],
        ),
        compiler_params=pltpu.CompilerParams(
            dimension_semantics=("parallel",),
            vmem_limit_bytes=vmem_limit,
        ),
    )(x_tiled, wqkv_t, bqkv_f.reshape(1, 3 * C), wproj_t, bproj_f.reshape(1, C))

    return out.reshape(B, n_pad, C)[:, :N, :]


def attention_reference(x, wqkv, bqkv, wproj, bproj, *, num_heads,
                        qk_scale=None):
    B, N, C = x.shape
    hd = C // num_heads
    scale = qk_scale if qk_scale is not None else hd ** (-0.5)
    qkv = jnp.einsum("bnc,dc->bnd", x, wqkv)
    if bqkv is not None:
        qkv = qkv + bqkv[None, None, :]
    qkv = qkv.reshape(B, N, 3, num_heads, hd).transpose(2, 0, 3, 1, 4)
    q, k, v = qkv[0], qkv[1], qkv[2]                      # (B, H, N, hd)
    attn = jnp.einsum("bhnd,bhmd->bhnm", q, k) * scale
    attn = jax.nn.softmax(attn, axis=-1)
    out = jnp.einsum("bhnm,bhmd->bhnd", attn, v)
    out = out.transpose(0, 2, 1, 3).reshape(B, N, C)
    return jnp.einsum("bnc,dc->bnd", out, wproj) + bproj[None, None, :]


if __name__ == "__main__":
    def run_case(B, N, C, num_heads, key):
        kx, kw1, kb1, kw2, kb2 = jax.random.split(key, 5)
        x = jax.random.normal(kx, (B, N, C), dtype=jnp.float32)
        # nn.Linear weights are (out, in); qkv_bias=True as in the ViT default.
        wqkv = jax.random.normal(kw1, (3 * C, C), dtype=jnp.float32) * 0.05
        bqkv = jax.random.normal(kb1, (3 * C,), dtype=jnp.float32) * 0.05
        wproj = jax.random.normal(kw2, (C, C), dtype=jnp.float32) * 0.05
        bproj = jax.random.normal(kb2, (C,), dtype=jnp.float32) * 0.05

        out = attention_forward(x, wqkv, bqkv, wproj, bproj,
                                num_heads=num_heads)
        out = jax.block_until_ready(out)
        ref = attention_reference(x, wqkv, bqkv, wproj, bproj,
                                  num_heads=num_heads)
        assert out.shape == (B, N, C)
        max_err = float(jnp.max(jnp.abs(out - ref)))
        # Tolerance slightly relaxed because the softmax denominator uses the
        # EUP approximate reciprocal.
        assert jnp.allclose(out, ref, atol=2e-3, rtol=2e-3), max_err

    key = jax.random.PRNGKey(0)
    k1, k2 = jax.random.split(key)
    # Small shapes consistent with the module's Attention block.
    run_case(B=2, N=8, C=32, num_heads=8, key=k1)
    # Exercise sequence padding (+ key mask), batch row-tiling and the
    # 128-lane head-pair path (hd=64).
    run_case(B=4, N=12, C=128, num_heads=2, key=k2)
    print("KERNEL_OK")
</pallas_src>

<mosaic_0001>
module attributes {stable_mosaic.version = 11 : i64} {
  func.func @_attention_kernel(%arg0: i32, %arg1: memref<1x8x32xf32, #tpu.memory_space<vmem>>, %arg2: memref<32x96xf32, #tpu.memory_space<vmem>>, %arg3: memref<1x96xf32, #tpu.memory_space<vmem>>, %arg4: memref<32x32xf32, #tpu.memory_space<vmem>>, %arg5: memref<1x32xf32, #tpu.memory_space<vmem>>, %arg6: memref<1x8x32xf32, #tpu.memory_space<vmem>>, %arg7: memref<8x96xf32, #tpu.memory_space<vmem>>, %arg8: memref<8x32xf32, #tpu.memory_space<vmem>>) attributes {dimension_semantics = [#tpu.dimension_semantics<parallel>], iteration_bounds = array<i64: 2>, scalar_prefetch = 0 : i64, scratch_operands = 2 : i64, tpu.core_type = #tpu.core_type<tc>, window_params = [{transform_indices = @transform_0, window_bounds = array<i64: 1, 8, 32>}, {pipeline_mode = #tpu.pipeline_mode<synchronous>, transform_indices = @transform_1, window_bounds = array<i64: 32, 96>}, {pipeline_mode = #tpu.pipeline_mode<synchronous>, transform_indices = @transform_2, window_bounds = array<i64: 1, 96>}, {pipeline_mode = #tpu.pipeline_mode<synchronous>, transform_indices = @transform_3, window_bounds = array<i64: 32, 32>}, {pipeline_mode = #tpu.pipeline_mode<synchronous>, transform_indices = @transform_4, window_bounds = array<i64: 1, 32>}, {transform_indices = @transform_5, window_bounds = array<i64: 1, 8, 32>}]} {
    %c0 = arith.constant 0 : index
    %c0_0 = arith.constant 0 : index
    %c0_1 = arith.constant 0 : index
    %0 = vector.load %arg1[%c0, %c0_0, %c0_1] : memref<1x8x32xf32, #tpu.memory_space<vmem>>, vector<1x8x32xf32>
    %1 = vector.shape_cast %0 : vector<1x8x32xf32> to vector<8x32xf32>
    %c0_2 = arith.constant 0 : index
    %c0_3 = arith.constant 0 : index
    %2 = vector.load %arg2[%c0_2, %c0_3] : memref<32x96xf32, #tpu.memory_space<vmem>>, vector<32x96xf32>
    %cst = arith.constant dense<0.000000e+00> : vector<8x96xf32>
    %3 = tpu.matmul %1, %2, %cst {dimension_numbers = #tpu.dot_dimension_numbers<[1], [0], [0], [1], [0, 0, 1, 1], [], []>} : vector<8x32xf32>, vector<32x96xf32>, vector<8x96xf32> -> vector<8x96xf32>
    %c0_4 = arith.constant 0 : index
    %c0_5 = arith.constant 0 : index
    %4 = vector.load %arg3[%c0_4, %c0_5] : memref<1x96xf32, #tpu.memory_space<vmem>>, vector<1x96xf32>
    %5 = vector.broadcast %4 : vector<1x96xf32> to vector<8x96xf32>
    %6 = arith.addf %3, %5 : vector<8x96xf32>
    %c0_6 = arith.constant 0 : index
    %c0_7 = arith.constant 0 : index
    %7 = vector.load %arg7[%c0_6, %c0_7] : memref<8x96xf32, #tpu.memory_space<vmem>>, vector<8x96xf32>
    tpu.vector_store %arg7[%c0_6, %c0_7], %6 {strides = array<i32>} : memref<8x96xf32, #tpu.memory_space<vmem>>, vector<8x96xf32>,
    %c0_8 = arith.constant 0 : index
    %c0_9 = arith.constant 0 : index
    %8 = vector.load %arg7[%c0_8, %c0_9] : memref<8x96xf32, #tpu.memory_space<vmem>>, vector<8x32xf32>
    %9 = vector.shape_cast %8 : vector<8x32xf32> to vector<1x8x32xf32>
    %c0_10 = arith.constant 0 : index
    %c32 = arith.constant 32 : index
    %10 = vector.load %arg7[%c0_10, %c32] : memref<8x96xf32, #tpu.memory_space<vmem>>, vector<8x32xf32>
    %11 = vector.shape_cast %10 : vector<8x32xf32> to vector<1x8x32xf32>
    %c0_11 = arith.constant 0 : index
    %c64 = arith.constant 64 : index
    %12 = vector.load %arg7[%c0_11, %c64] : memref<8x96xf32, #tpu.memory_space<vmem>>, vector<8x32xf32>
    %13 = vector.shape_cast %12 : vector<8x32xf32> to vector<1x8x32xf32>
    %14 = vector.extract_strided_slice %9 {offsets = [0, 0, 0], sizes = [1, 8, 4], strides = [1, 1, 1]} : vector<1x8x32xf32> to vector<1x8x4xf32>
    %15 = vector.extract_strided_slice %11 {offsets = [0, 0, 0], sizes = [1, 8, 4], strides = [1, 1, 1]} : vector<1x8x32xf32> to vector<1x8x4xf32>
    %16 = vector.extract_strided_slice %13 {offsets = [0, 0, 0], sizes = [1, 8, 4], strides = [1, 1, 1]} : vector<1x8x32xf32> to vector<1x8x4xf32>
    "tpu.trace_start"() <{level = 10 : i32, message = "bqd,bkd->bqk"}> : () -> ()
    %cst_12 = arith.constant dense<0.000000e+00> : vector<1x8x8xf32>
    %17 = tpu.matmul %14, %15, %cst_12 {dimension_numbers = #tpu.dot_dimension_numbers<[2], [2], [1], [1], [0, 0, 0, 1, 1, 1], [0], [0]>} : vector<1x8x4xf32>, vector<1x8x4xf32>, vector<1x8x8xf32> -> vector<1x8x8xf32>
    "tpu.trace_stop"() : () -> ()
    %cst_13 = arith.constant dense<0xFF800000> : vector<1x8xf32>
    %18 = vector.multi_reduction <maximumf>, %17, %cst_13 [2] : vector<1x8x8xf32> to vector<1x8xf32>
    %19 = vector.shape_cast %18 : vector<1x8xf32> to vector<1x8x1xf32>
    %20 = vector.broadcast %19 : vector<1x8x1xf32> to vector<1x8x8xf32>
    %21 = arith.subf %17, %20 : vector<1x8x8xf32>
    %22 = math.exp %21 : vector<1x8x8xf32>
    %cst_14 = arith.constant dense<0.000000e+00> : vector<1x8xf32>
    %23 = vector.multi_reduction <add>, %22, %cst_14 [2] : vector<1x8x8xf32> to vector<1x8xf32>
    %24 = vector.shape_cast %23 : vector<1x8xf32> to vector<1x8x1xf32>
    %25 = tpu.reciprocal %24 {approx = true} : vector<1x8x1xf32> -> vector<1x8x1xf32>
    %26 = vector.broadcast %25 : vector<1x8x1xf32> to vector<1x8x8xf32>
    %27 = arith.mulf %22, %26 : vector<1x8x8xf32>
    "tpu.trace_start"() <{level = 10 : i32, message = "bqk,bkd->bqd"}> : () -> ()
    %cst_15 = arith.constant dense<0.000000e+00> : vector<1x8x4xf32>
    %28 = tpu.matmul %27, %16, %cst_15 {dimension_numbers = #tpu.dot_dimension_numbers<[2], [1], [1], [2], [0, 0, 0, 1, 1, 2], [0], [0]>} : vector<1x8x8xf32>, vector<1x8x4xf32>, vector<1x8x4xf32> -> vector<1x8x4xf32>
    "tpu.trace_stop"() : () -> ()
    %29 = vector.extract_strided_slice %9 {offsets = [0, 0, 4], sizes = [1, 8, 4], strides = [1, 1, 1]} : vector<1x8x32xf32> to vector<1x8x4xf32>
    %30 = vector.extract_strided_slice %11 {offsets = [0, 0, 4], sizes = [1, 8, 4], strides = [1, 1, 1]} : vector<1x8x32xf32> to vector<1x8x4xf32>
    %31 = vector.extract_strided_slice %13 {offsets = [0, 0, 4], sizes = [1, 8, 4], strides = [1, 1, 1]} : vector<1x8x32xf32> to vector<1x8x4xf32>
    "tpu.trace_start"() <{level = 10 : i32, message = "bqd,bkd->bqk"}> : () -> ()
    %cst_16 = arith.constant dense<0.000000e+00> : vector<1x8x8xf32>
    %32 = tpu.matmul %29, %30, %cst_16 {dimension_numbers = #tpu.dot_dimension_numbers<[2], [2], [1], [1], [0, 0, 0, 1, 1, 1], [0], [0]>} : vector<1x8x4xf32>, vector<1x8x4xf32>, vector<1x8x8xf32> -> vector<1x8x8xf32>
    "tpu.trace_stop"() : () -> ()
    %cst_17 = arith.constant dense<0xFF800000> : vector<1x8xf32>
    %33 = vector.multi_reduction <maximumf>, %32, %cst_17 [2] : vector<1x8x8xf32> to vector<1x8xf32>
    %34 = vector.shape_cast %33 : vector<1x8xf32> to vector<1x8x1xf32>
    %35 = vector.broadcast %34 : vector<1x8x1xf32> to vector<1x8x8xf32>
    %36 = arith.subf %32, %35 : vector<1x8x8xf32>
    %37 = math.exp %36 : vector<1x8x8xf32>
    %cst_18 = arith.constant dense<0.000000e+00> : vector<1x8xf32>
    %38 = vector.multi_reduction <add>, %37, %cst_18 [2] : vector<1x8x8xf32> to vector<1x8xf32>
    %39 = vector.shape_cast %38 : vector<1x8xf32> to vector<1x8x1xf32>
    %40 = tpu.reciprocal %39 {approx = true} : vector<1x8x1xf32> -> vector<1x8x1xf32>
    %41 = vector.broadcast %40 : vector<1x8x1xf32> to vector<1x8x8xf32>
    %42 = arith.mulf %37, %41 : vector<1x8x8xf32>
    "tpu.trace_start"() <{level = 10 : i32, message = "bqk,bkd->bqd"}> : () -> ()
    %cst_19 = arith.constant dense<0.000000e+00> : vector<1x8x4xf32>
    %43 = tpu.matmul %42, %31, %cst_19 {dimension_numbers = #tpu.dot_dimension_numbers<[2], [1], [1], [2], [0, 0, 0, 1, 1, 2], [0], [0]>} : vector<1x8x8xf32>, vector<1x8x4xf32>, vector<1x8x4xf32> -> vector<1x8x4xf32>
    "tpu.trace_stop"() : () -> ()
    %44 = vector.extract_strided_slice %9 {offsets = [0, 0, 8], sizes = [1, 8, 4], strides = [1, 1, 1]} : vector<1x8x32xf32> to vector<1x8x4xf32>
    %45 = vector.extract_strided_slice %11 {offsets = [0, 0, 8], sizes = [1, 8, 4], strides = [1, 1, 1]} : vector<1x8x32xf32> to vector<1x8x4xf32>
    %46 = vector.extract_strided_slice %13 {offsets = [0, 0, 8], sizes = [1, 8, 4], strides = [1, 1, 1]} : vector<1x8x32xf32> to vector<1x8x4xf32>
    "tpu.trace_start"() <{level = 10 : i32, message = "bqd,bkd->bqk"}> : () -> ()
    %cst_20 = arith.constant dense<0.000000e+00> : vector<1x8x8xf32>
    %47 = tpu.matmul %44, %45, %cst_20 {dimension_numbers = #tpu.dot_dimension_numbers<[2], [2], [1], [1], [0, 0, 0, 1, 1, 1], [0], [0]>} : vector<1x8x4xf32>, vector<1x8x4xf32>, vector<1x8x8xf32> -> vector<1x8x8xf32>
    "tpu.trace_stop"() : () -> ()
    %cst_21 = arith.constant dense<0xFF800000> : vector<1x8xf32>
    %48 = vector.multi_reduction <maximumf>, %47, %cst_21 [2] : vector<1x8x8xf32> to vector<1x8xf32>
    %49 = vector.shape_cast %48 : vector<1x8xf32> to vector<1x8x1xf32>
    %50 = vector.broadcast %49 : vector<1x8x1xf32> to vector<1x8x8xf32>
    %51 = arith.subf %47, %50 : vector<1x8x8xf32>
    %52 = math.exp %51 : vector<1x8x8xf32>
    %cst_22 = arith.constant dense<0.000000e+00> : vector<1x8xf32>
    %53 = vector.multi_reduction <add>, %52, %cst_22 [2] : vector<1x8x8xf32> to vector<1x8xf32>
    %54 = vector.shape_cast %53 : vector<1x8xf32> to vector<1x8x1xf32>
    %55 = tpu.reciprocal %54 {approx = true} : vector<1x8x1xf32> -> vector<1x8x1xf32>
    %56 = vector.broadcast %55 : vector<1x8x1xf32> to vector<1x8x8xf32>
    %57 = arith.mulf %52, %56 : vector<1x8x8xf32>
    "tpu.trace_start"() <{level = 10 : i32, message = "bqk,bkd->bqd"}> : () -> ()
    %cst_23 = arith.constant dense<0.000000e+00> : vector<1x8x4xf32>
    %58 = tpu.matmul %57, %46, %cst_23 {dimension_numbers = #tpu.dot_dimension_numbers<[2], [1], [1], [2], [0, 0, 0, 1, 1, 2], [0], [0]>} : vector<1x8x8xf32>, vector<1x8x4xf32>, vector<1x8x4xf32> -> vector<1x8x4xf32>
    "tpu.trace_stop"() : () -> ()
    %59 = vector.extract_strided_slice %9 {offsets = [0, 0, 12], sizes = [1, 8, 4], strides = [1, 1, 1]} : vector<1x8x32xf32> to vector<1x8x4xf32>
    %60 = vector.extract_strided_slice %11 {offsets = [0, 0, 12], sizes = [1, 8, 4], strides = [1, 1, 1]} : vector<1x8x32xf32> to vector<1x8x4xf32>
    %61 = vector.extract_strided_slice %13 {offsets = [0, 0, 12], sizes = [1, 8, 4], strides = [1, 1, 1]} : vector<1x8x32xf32> to vector<1x8x4xf32>
    "tpu.trace_start"() <{level = 10 : i32, message = "bqd,bkd->bqk"}> : () -> ()
    %cst_24 = arith.constant dense<0.000000e+00> : vector<1x8x8xf32>
    %62 = tpu.matmul %59, %60, %cst_24 {dimension_numbers = #tpu.dot_dimension_numbers<[2], [2], [1], [1], [0, 0, 0, 1, 1, 1], [0], [0]>} : vector<1x8x4xf32>, vector<1x8x4xf32>, vector<1x8x8xf32> -> vector<1x8x8xf32>
    "tpu.trace_stop"() : () -> ()
    %cst_25 = arith.constant dense<0xFF800000> : vector<1x8xf32>
    %63 = vector.multi_reduction <maximumf>, %62, %cst_25 [2] : vector<1x8x8xf32> to vector<1x8xf32>
    %64 = vector.shape_cast %63 : vector<1x8xf32> to vector<1x8x1xf32>
    %65 = vector.broadcast %64 : vector<1x8x1xf32> to vector<1x8x8xf32>
    %66 = arith.subf %62, %65 : vector<1x8x8xf32>
    %67 = math.exp %66 : vector<1x8x8xf32>
    %cst_26 = arith.constant dense<0.000000e+00> : vector<1x8xf32>
    %68 = vector.multi_reduction <add>, %67, %cst_26 [2] : vector<1x8x8xf32> to vector<1x8xf32>
    %69 = vector.shape_cast %68 : vector<1x8xf32> to vector<1x8x1xf32>
    %70 = tpu.reciprocal %69 {approx = true} : vector<1x8x1xf32> -> vector<1x8x1xf32>
    %71 = vector.broadcast %70 : vector<1x8x1xf32> to vector<1x8x8xf32>
    %72 = arith.mulf %67, %71 : vector<1x8x8xf32>
    "tpu.trace_start"() <{level = 10 : i32, message = "bqk,bkd->bqd"}> : () -> ()
    %cst_27 = arith.constant dense<0.000000e+00> : vector<1x8x4xf32>
    %73 = tpu.matmul %72, %61, %cst_27 {dimension_numbers = #tpu.dot_dimension_numbers<[2], [1], [1], [2], [0, 0, 0, 1, 1, 2], [0], [0]>} : vector<1x8x8xf32>, vector<1x8x4xf32>, vector<1x8x4xf32> -> vector<1x8x4xf32>
    "tpu.trace_stop"() : () -> ()
    %74 = vector.extract_strided_slice %9 {offsets = [0, 0, 16], sizes = [1, 8, 4], strides = [1, 1, 1]} : vector<1x8x32xf32> to vector<1x8x4xf32>
    %75 = vector.extract_strided_slice %11 {offsets = [0, 0, 16], sizes = [1, 8, 4], strides = [1, 1, 1]} : vector<1x8x32xf32> to vector<1x8x4xf32>
    %76 = vector.extract_strided_slice %13 {offsets = [0, 0, 16], sizes = [1, 8, 4], strides = [1, 1, 1]} : vector<1x8x32xf32> to vector<1x8x4xf32>
    "tpu.trace_start"() <{level = 10 : i32, message = "bqd,bkd->bqk"}> : () -> ()
    %cst_28 = arith.constant dense<0.000000e+00> : vector<1x8x8xf32>
    %77 = tpu.matmul %74, %75, %cst_28 {dimension_numbers = #tpu.dot_dimension_numbers<[2], [2], [1], [1], [0, 0, 0, 1, 1, 1], [0], [0]>} : vector<1x8x4xf32>, vector<1x8x4xf32>, vector<1x8x8xf32> -> vector<1x8x8xf32>
    "tpu.trace_stop"() : () -> ()
    %cst_29 = arith.constant dense<0xFF800000> : vector<1x8xf32>
    %78 = vector.multi_reduction <maximumf>, %77, %cst_29 [2] : vector<1x8x8xf32> to vector<1x8xf32>
    %79 = vector.shape_cast %78 : vector<1x8xf32> to vector<1x8x1xf32>
    %80 = vector.broadcast %79 : vector<1x8x1xf32> to vector<1x8x8xf32>
    %81 = arith.subf %77, %80 : vector<1x8x8xf32>
    %82 = math.exp %81 : vector<1x8x8xf32>
    %cst_30 = arith.constant dense<0.000000e+00> : vector<1x8xf32>
    %83 = vector.multi_reduction <add>, %82, %cst_30 [2] : vector<1x8x8xf32> to vector<1x8xf32>
    %84 = vector.shape_cast %83 : vector<1x8xf32> to vector<1x8x1xf32>
    %85 = tpu.reciprocal %84 {approx = true} : vector<1x8x1xf32> -> vector<1x8x1xf32>
    %86 = vector.broadcast %85 : vector<1x8x1xf32> to vector<1x8x8xf32>
    %87 = arith.mulf %82, %86 : vector<1x8x8xf32>
    "tpu.trace_start"() <{level = 10 : i32, message = "bqk,bkd->bqd"}> : () -> ()
    %cst_31 = arith.constant dense<0.000000e+00> : vector<1x8x4xf32>
    %88 = tpu.matmul %87, %76, %cst_31 {dimension_numbers = #tpu.dot_dimension_numbers<[2], [1], [1], [2], [0, 0, 0, 1, 1, 2], [0], [0]>} : vector<1x8x8xf32>, vector<1x8x4xf32>, vector<1x8x4xf32> -> vector<1x8x4xf32>
    "tpu.trace_stop"() : () -> ()
    %89 = vector.extract_strided_slice %9 {offsets = [0, 0, 20], sizes = [1, 8, 4], strides = [1, 1, 1]} : vector<1x8x32xf32> to vector<1x8x4xf32>
    %90 = vector.extract_strided_slice %11 {offsets = [0, 0, 20], sizes = [1, 8, 4], strides = [1, 1, 1]} : vector<1x8x32xf32> to vector<1x8x4xf32>
    %91 = vector.extract_strided_slice %13 {offsets = [0, 0, 20], sizes = [1, 8, 4], strides = [1, 1, 1]} : vector<1x8x32xf32> to vector<1x8x4xf32>
    "tpu.trace_start"() <{level = 10 : i32, message = "bqd,bkd->bqk"}> : () -> ()
    %cst_32 = arith.constant dense<0.000000e+00> : vector<1x8x8xf32>
    %92 = tpu.matmul %89, %90, %cst_32 {dimension_numbers = #tpu.dot_dimension_numbers<[2], [2], [1], [1], [0, 0, 0, 1, 1, 1], [0], [0]>} : vector<1x8x4xf32>, vector<1x8x4xf32>, vector<1x8x8xf32> -> vector<1x8x8xf32>
    "tpu.trace_stop"() : () -> ()
    %cst_33 = arith.constant dense<0xFF800000> : vector<1x8xf32>
    %93 = vector.multi_reduction <maximumf>, %92, %cst_33 [2] : vector<1x8x8xf32> to vector<1x8xf32>
    %94 = vector.shape_cast %93 : vector<1x8xf32> to vector<1x8x1xf32>
    %95 = vector.broadcast %94 : vector<1x8x1xf32> to vector<1x8x8xf32>
    %96 = arith.subf %92, %95 : vector<1x8x8xf32>
    %97 = math.exp %96 : vector<1x8x8xf32>
    %cst_34 = arith.constant dense<0.000000e+00> : vector<1x8xf32>
    %98 = vector.multi_reduction <add>, %97, %cst_34 [2] : vector<1x8x8xf32> to vector<1x8xf32>
    %99 = vector.shape_cast %98 : vector<1x8xf32> to vector<1x8x1xf32>
    %100 = tpu.reciprocal %99 {approx = true} : vector<1x8x1xf32> -> vector<1x8x1xf32>
    %101 = vector.broadcast %100 : vector<1x8x1xf32> to vector<1x8x8xf32>
    %102 = arith.mulf %97, %101 : vector<1x8x8xf32>
    "tpu.trace_start"() <{level = 10 : i32, message = "bqk,bkd->bqd"}> : () -> ()
    %cst_35 = arith.constant dense<0.000000e+00> : vector<1x8x4xf32>
    %103 = tpu.matmul %102, %91, %cst_35 {dimension_numbers = #tpu.dot_dimension_numbers<[2], [1], [1], [2], [0, 0, 0, 1, 1, 2], [0], [0]>} : vector<1x8x8xf32>, vector<1x8x4xf32>, vector<1x8x4xf32> -> vector<1x8x4xf32>
    "tpu.trace_stop"() : () -> ()
    %104 = vector.extract_strided_slice %9 {offsets = [0, 0, 24], sizes = [1, 8, 4], strides = [1, 1, 1]} : vector<1x8x32xf32> to vector<1x8x4xf32>
    %105 = vector.extract_strided_slice %11 {offsets = [0, 0, 24], sizes = [1, 8, 4], strides = [1, 1, 1]} : vector<1x8x32xf32> to vector<1x8x4xf32>
    %106 = vector.extract_strided_slice %13 {offsets = [0, 0, 24], sizes = [1, 8, 4], strides = [1, 1, 1]} : vector<1x8x32xf32> to vector<1x8x4xf32>
    "tpu.trace_start"() <{level = 10 : i32, message = "bqd,bkd->bqk"}> : () -> ()
    %cst_36 = arith.constant dense<0.000000e+00> : vector<1x8x8xf32>
    %107 = tpu.matmul %104, %105, %cst_36 {dimension_numbers = #tpu.dot_dimension_numbers<[2], [2], [1], [1], [0, 0, 0, 1, 1, 1], [0], [0]>} : vector<1x8x4xf32>, vector<1x8x4xf32>, vector<1x8x8xf32> -> vector<1x8x8xf32>
    "tpu.trace_stop"() : () -> ()
    %cst_37 = arith.constant dense<0xFF800000> : vector<1x8xf32>
    %108 = vector.multi_reduction <maximumf>, %107, %cst_37 [2] : vector<1x8x8xf32> to vector<1x8xf32>
    %109 = vector.shape_cast %108 : vector<1x8xf32> to vector<1x8x1xf32>
    %110 = vector.broadcast %109 : vector<1x8x1xf32> to vector<1x8x8xf32>
    %111 = arith.subf %107, %110 : vector<1x8x8xf32>
    %112 = math.exp %111 : vector<1x8x8xf32>
    %cst_38 = arith.constant dense<0.000000e+00> : vector<1x8xf32>
    %113 = vector.multi_reduction <add>, %112, %cst_38 [2] : vector<1x8x8xf32> to vector<1x8xf32>
    %114 = vector.shape_cast %113 : vector<1x8xf32> to vector<1x8x1xf32>
    %115 = tpu.reciprocal %114 {approx = true} : vector<1x8x1xf32> -> vector<1x8x1xf32>
    %116 = vector.broadcast %115 : vector<1x8x1xf32> to vector<1x8x8xf32>
    %117 = arith.mulf %112, %116 : vector<1x8x8xf32>
    "tpu.trace_start"() <{level = 10 : i32, message = "bqk,bkd->bqd"}> : () -> ()
    %cst_39 = arith.constant dense<0.000000e+00> : vector<1x8x4xf32>
    %118 = tpu.matmul %117, %106, %cst_39 {dimension_numbers = #tpu.dot_dimension_numbers<[2], [1], [1], [2], [0, 0, 0, 1, 1, 2], [0], [0]>} : vector<1x8x8xf32>, vector<1x8x4xf32>, vector<1x8x4xf32> -> vector<1x8x4xf32>
    "tpu.trace_stop"() : () -> ()
    %119 = vector.extract_strided_slice %9 {offsets = [0, 0, 28], sizes = [1, 8, 4], strides = [1, 1, 1]} : vector<1x8x32xf32> to vector<1x8x4xf32>
    %120 = vector.extract_strided_slice %11 {offsets = [0, 0, 28], sizes = [1, 8, 4], strides = [1, 1, 1]} : vector<1x8x32xf32> to vector<1x8x4xf32>
    %121 = vector.extract_strided_slice %13 {offsets = [0, 0, 28], sizes = [1, 8, 4], strides = [1, 1, 1]} : vector<1x8x32xf32> to vector<1x8x4xf32>
    "tpu.trace_start"() <{level = 10 : i32, message = "bqd,bkd->bqk"}> : () -> ()
    %cst_40 = arith.constant dense<0.000000e+00> : vector<1x8x8xf32>
    %122 = tpu.matmul %119, %120, %cst_40 {dimension_numbers = #tpu.dot_dimension_numbers<[2], [2], [1], [1], [0, 0, 0, 1, 1, 1], [0], [0]>} : vector<1x8x4xf32>, vector<1x8x4xf32>, vector<1x8x8xf32> -> vector<1x8x8xf32>
    "tpu.trace_stop"() : () -> ()
    %cst_41 = arith.constant dense<0xFF800000> : vector<1x8xf32>
    %123 = vector.multi_reduction <maximumf>, %122, %cst_41 [2] : vector<1x8x8xf32> to vector<1x8xf32>
    %124 = vector.shape_cast %123 : vector<1x8xf32> to vector<1x8x1xf32>
    %125 = vector.broadcast %124 : vector<1x8x1xf32> to vector<1x8x8xf32>
    %126 = arith.subf %122, %125 : vector<1x8x8xf32>
    %127 = math.exp %126 : vector<1x8x8xf32>
    %cst_42 = arith.constant dense<0.000000e+00> : vector<1x8xf32>
    %128 = vector.multi_reduction <add>, %127, %cst_42 [2] : vector<1x8x8xf32> to vector<1x8xf32>
    %129 = vector.shape_cast %128 : vector<1x8xf32> to vector<1x8x1xf32>
    %130 = tpu.reciprocal %129 {approx = true} : vector<1x8x1xf32> -> vector<1x8x1xf32>
    %131 = vector.broadcast %130 : vector<1x8x1xf32> to vector<1x8x8xf32>
    %132 = arith.mulf %127, %131 : vector<1x8x8xf32>
    "tpu.trace_start"() <{level = 10 : i32, message = "bqk,bkd->bqd"}> : () -> ()
    %cst_43 = arith.constant dense<0.000000e+00> : vector<1x8x4xf32>
    %133 = tpu.matmul %132, %121, %cst_43 {dimension_numbers = #tpu.dot_dimension_numbers<[2], [1], [1], [2], [0, 0, 0, 1, 1, 2], [0], [0]>} : vector<1x8x8xf32>, vector<1x8x4xf32>, vector<1x8x4xf32> -> vector<1x8x4xf32>
    "tpu.trace_stop"() : () -> ()
    %134 = tpu.concatenate %28, %43, %58, %73, %88, %103, %118, %133 in 2 : vector<1x8x4xf32>, vector<1x8x4xf32>, vector<1x8x4xf32>, vector<1x8x4xf32>, vector<1x8x4xf32>, vector<1x8x4xf32>, vector<1x8x4xf32>, vector<1x8x4xf32> -> vector<1x8x32xf32>
    %135 = vector.shape_cast %134 : vector<1x8x32xf32> to vector<8x32xf32>
    %c0_44 = arith.constant 0 : index
    %c0_45 = arith.constant 0 : index
    %136 = vector.load %arg8[%c0_44, %c0_45] : memref<8x32xf32, #tpu.memory_space<vmem>>, vector<8x32xf32>
    tpu.vector_store %arg8[%c0_44, %c0_45], %135 {strides = array<i32>} : memref<8x32xf32, #tpu.memory_space<vmem>>, vector<8x32xf32>,
    %c0_46 = arith.constant 0 : index
    %c0_47 = arith.constant 0 : index
    %137 = vector.load %arg8[%c0_46, %c0_47] : memref<8x32xf32, #tpu.memory_space<vmem>>, vector<8x32xf32>
    %c0_48 = arith.constant 0 : index
    %c0_49 = arith.constant 0 : index
    %138 = vector.load %arg4[%c0_48, %c0_49] : memref<32x32xf32, #tpu.memory_space<vmem>>, vector<32x32xf32>
    %cst_50 = arith.constant dense<0.000000e+00> : vector<8x32xf32>
    %139 = tpu.matmul %137, %138, %cst_50 {dimension_numbers = #tpu.dot_dimension_numbers<[1], [0], [0], [1], [0, 0, 1, 1], [], []>} : vector<8x32xf32>, vector<32x32xf32>, vector<8x32xf32> -> vector<8x32xf32>
    %c0_51 = arith.constant 0 : index
    %c0_52 = arith.constant 0 : index
    %140 = vector.load %arg5[%c0_51, %c0_52] : memref<1x32xf32, #tpu.memory_space<vmem>>, vector<1x32xf32>
    %141 = vector.broadcast %140 : vector<1x32xf32> to vector<8x32xf32>
    %142 = arith.addf %139, %141 : vector<8x32xf32>
    %c0_53 = arith.constant 0 : index
    %c0_54 = arith.constant 0 : index
    %c0_55 = arith.constant 0 : index
    %143 = vector.load %arg6[%c0_53, %c0_54, %c0_55] : memref<1x8x32xf32, #tpu.memory_space<vmem>>, vector<1x8x32xf32>
    %144 = vector.shape_cast %143 : vector<1x8x32xf32> to vector<8x32xf32>
    %145 = vector.shape_cast %142 : vector<8x32xf32> to vector<1x8x32xf32>
    tpu.vector_store %arg6[%c0_53, %c0_54, %c0_55], %145 {strides = array<i32>} : memref<1x8x32xf32, #tpu.memory_space<vmem>>, vector<1x8x32xf32>,
    return
  }
  func.func @transform_0(%arg0: i32) -> (i32, i32, i32) {
    %c0_i32 = arith.constant 0 : i32
    %c0_i32_0 = arith.constant 0 : i32
    %c0_i32_1 = arith.constant 0 : i32
    return %arg0, %c0_i32, %c0_i32_0 : i32, i32, i32
  }
  func.func @transform_1(%arg0: i32) -> (i32, i32) {
    %c0_i32 = arith.constant 0 : i32
    %c0_i32_0 = arith.constant 0 : i32
    %c0_i32_1 = arith.constant 0 : i32
    return %c0_i32, %c0_i32_0 : i32, i32
  }
  func.func @transform_2(%arg0: i32) -> (i32, i32) {
    %c0_i32 = arith.constant 0 : i32
    %c0_i32_0 = arith.constant 0 : i32
    %c0_i32_1 = arith.constant 0 : i32
    return %c0_i32, %c0_i32_0 : i32, i32
  }
  func.func @transform_3(%arg0: i32) -> (i32, i32) {
    %c0_i32 = arith.constant 0 : i32
    %c0_i32_0 = arith.constant 0 : i32
    %c0_i32_1 = arith.constant 0 : i32
    return %c0_i32, %c0_i32_0 : i32, i32
  }
  func.func @transform_4(%arg0: i32) -> (i32, i32) {
    %c0_i32 = arith.constant 0 : i32
    %c0_i32_0 = arith.constant 0 : i32
    %c0_i32_1 = arith.constant 0 : i32
    return %c0_i32, %c0_i32_0 : i32, i32
  }
  func.func @transform_5(%arg0: i32) -> (i32, i32, i32) {
    %c0_i32 = arith.constant 0 : i32
    %c0_i32_0 = arith.constant 0 : i32
    %c0_i32_1 = arith.constant 0 : i32
    return %arg0, %c0_i32, %c0_i32_0 : i32, i32, i32
  }
}

</mosaic_0001>

<bundles_post_ra>
// kernel: tpu_custom_call.1
= control target key start
LH: loop header
LB: loop body
LE: loop exit
PB: predicated region body
PF: predicated region fallthrough
CT: control target
= control target key end

     0   :  { %10 = vsyncpa [#allocation5], 0  ;;  %s2874_s0 = inlined_call_operand.hbm [shape: f32[2,8,32], index: 0, kind: input, shape index: {}]   ;;  %s2875_s1 = inlined_call_operand.hbm [shape: f32[32,96], index: 1, kind: input, shape index: {}]   ;;  %s2876_s2 = inlined_call_operand.vmem [shape: f32[1,96], index: 2, kind: input, shape index: {}]   ;;  %s2877_s3 = inlined_call_operand.hbm [shape: f32[32,32], index: 3, kind: input, shape index: {}]   ;;  %s2878_s4 = inlined_call_operand.vmem [shape: f32[1,32], index: 4, kind: input, shape index: {}]   ;;  %s2879_s5 = inlined_call_operand.hbm [shape: f32[2,8,32], index: 5, kind: output, shape index: {}]  }
   0x1   :  { %12 = vsyncpa [#allocation5 + $0x1], 0 }
   0x2   :  { %13 = vsyncpa [#allocation8], 0 }
   0x3   :  { %14 = vsyncpa [#allocation6], 0 }
   0x4   :  { %16 = vsyncpa [#allocation6 + $0x1], 0  ;;  %s2470_s18 = smov 0   ;;  %s2472_s19 = smov 0  }
   0x5   :  { %s2474_s20 = smov 0   ;;  %s2476_s21 = smov 0  }
   0x6 LB: > { %s2491_s22 = sadd.s32 4294967295, %s2399_s21   ;;  %s1909_s23 = sadd.s32 4294967294, %s2399_s21   ;;  %s2399_s21 = sphi %s2476_s21, %s2899_s21   ;;  %s2395_s20 = sphi %s2474_s20, %s2898_s20   ;;  %s2391_s19 = sphi %s2472_s19, %s2897_s19   ;;  %s2387_s18 = sphi %s2470_s18, %s2896_s18  }
   0x7   : > { %p42_p0 = scmp.ne.s32.totalorder %s2391_s19, %s2387_s18  ;;  %p2880_p1 = scmp.eq.s32.totalorder %s2491_s22, 0 }
   0x8   : > { %p156_p3 = scmp.eq.s32.totalorder %s1909_s23, 1  ;;  %p1910_p5 = scmp.ge.s32.totalorder %s2399_s21, 1 }
   0x9   : > { %p2500_p4 = por %p2880_p1, %p42_p0  ;;  %p163_p7 = scmp.lt.s32.totalorder %s2399_s21, 3 }
   0xa   : > { %p2505_p6 = por %p156_p3, %p42_p0  ;;  %s2401_s27 = smov [#allocation7]  }
   0xb   : > { %s2883_s24 = scalar_select %p2500_p4, 1, 0 }
   0xc   : > { %s2884_s25 = scalar_select %p2505_p6, 1, 0 }
   0xd   : > { %p2510_p8 = pnand %p1910_p5, %p163_p7  ;;  %s175_s28 = sshll.u32 %s2401_s27, 4  ;;  %s2514_s28 = int_to_ptr.vmem [resolvable:$true] %s175_s28 }
   0xe   : > { %s2402_s30 = smov [#allocation9]   ;;  %s2243_s9 = scalar_lea.hbm %s2875_s1, 512 }
   0xf   : > { %p2121_p9 = pneg %p2510_p8  ;;  %s191_s6 = sshll.u32 %s2402_s30, 4  ;;  %s2525_s6 = int_to_ptr.vmem [resolvable:$true] %s191_s6 }
  0x10   : > { %p2244_p12 = scmp.ne.s32.totalorder %s2875_s1, %s2243_s9  ;;  %p2250_p5 = scmp.lt.u32.totalorder %s2243_s9, %s2875_s1 }
  0x11   : > { %p2521_p11 = pnand %p2121_p9, %p2880_p1 }
  0x13   : > { %p2245_p13 = pneg %p2521_p11 }
  0x15   : > { %p2246_p0 = pnand %p2245_p13, %p2244_p12 }
  0x17   : > { %p2247_p3 = pneg %p2246_p0 }
  0x19   : > { %p2252_p7 = pnand %p2250_p5, %p2247_p3 }
  0x1b   : > { %2255 = shalt.err (!%p2252_p7)
}
  0x1c   : > { %s2256_s14 = scalar_lea.vmem %s2514_s28, 512  ;;  %p2264_p2 = scmp.lt.s32.totalorder %s2514_s28, %s2514_s28 }
  0x1d   : > { %p2257_p9 = scmp.ne.s32.totalorder %s2514_s28, %s2256_s14  ;;  %p2265_p12 = scmp.lt.s32.totalorder %s2256_s14, %s2256_s14 }
  0x1f   : > { %p2259_p10 = pnand %p2257_p9, %p2245_p13  ;;  %p2266_p0 = por %p2265_p12, %p2264_p2 }
  0x21   : > { %p2260_p1 = pneg %p2259_p10 }
  0x23   : > { %p2267_p6 = pnand %p2266_p0, %p2260_p1 }
  0x25   : > { %2270 = shalt.err (!%p2267_p6)
}
  0x26   : > { %s2403_s15 = smov 128   ;;  %s2404_s16 = smov 8  }
  0x27   : > { %2124 = dma.hbm_to_vmem [thread:$0]  (!%p2521_p11), %s2875_s1, 512, %s2514_s28, [#allocation8], %s2403_s15, %s2403_s15, %s2404_s16  }
  0x28   : > { %s2271_s7 = scalar_lea.hbm %s2877_s3, 512 }
  0x29   : > { %p2272_p2 = scmp.ne.s32.totalorder %s2877_s3, %s2271_s7  ;;  %p2278_p10 = scmp.lt.u32.totalorder %s2271_s7, %s2877_s3 }
  0x2b   : > { %p2274_p1 = pnand %p2272_p2, %p2245_p13 }
  0x2d   : > { %p2275_p6 = pneg %p2274_p1 }
  0x2f   : > { %p2280_p3 = pnand %p2278_p10, %p2275_p6 }
  0x31   : > { %2283 = shalt.err (!%p2280_p3)
}
  0x32   : > { %s2284_s28 = scalar_lea.vmem %s2525_s6, 512  ;;  %p2292_p12 = scmp.lt.s32.totalorder %s2525_s6, %s2525_s6 }
  0x33   : > { %p2285_p5 = scmp.ne.s32.totalorder %s2525_s6, %s2284_s28  ;;  %p2293_p0 = scmp.lt.s32.totalorder %s2284_s28, %s2284_s28 }
  0x35   : > { %p2287_p7 = pnand %p2285_p5, %p2245_p13  ;;  %p2294_p2 = por %p2293_p0, %p2292_p12 }
  0x37   : > { %p2288_p9 = pneg %p2287_p7 }
  0x39   : > { %p2295_p1 = pnand %p2294_p2, %p2288_p9 }
  0x3b   : > { %2298 = shalt.err (!%p2295_p1)
}
  0x3c   : > { %2127 = dma.hbm_to_vmem [thread:$0]  (!%p2521_p11), %s2877_s3, 512, %s2525_s6, [#allocation8], %s2403_s15, %s2403_s15, %s2404_s16  }
  0x3d   : > { %s2580_s14 = sadd.s32 1, %s2399_s21   ;;  %s29_s29 = sadd.s32 1, %s2395_s20 }
  0x3e   : > { %s26_s17 = ssub.s32 %s2399_s21, %s2580_s14  ;;  %p36_p13 = scmp.ne.s32.totalorder %s2395_s20, %s2391_s19 }
  0x3f   : > { %p27_p6 = scmp.eq.s32.totalorder %s26_s17, 0  ;;  %p37_p10 = scmp.eq.s32.totalorder %s2399_s21, 0 }
  0x40   : > { %p2887_p3 = scmp.eq.s32.totalorder %s2491_s22, 1  ;;  %p2138_p7 = scmp.lt.s32.totalorder %s2399_s21, 2 }
  0x41   : > { %s2596_s27 = scalar_select %p27_p6, %s2395_s20, %s29_s29  }
  0x42   : > { %p2590_p5 = por %p2887_p3, %p36_p13  ;;  %p38_p9 = por %p37_p10, %p36_p13 }
  0x43   : > { %s208_s30 = sand.u32 1, %s2395_s20   ;;  %s1915_s6 = sshll.u32 %s2399_s21, 7 }
  0x44   : > { %s2888_s23 = scalar_select %p2590_p5, 1, 0 }
  0x45   : > { %s1914_s7 = sshll.u32 %s208_s30, 3  ;;  %s2603_s8 = scalar_lea.hbm %s2874_s0, %s1915_s6 }
  0x46   : > { %s212_s9 = scalar_lea.vmem [#allocation4], %s1914_s7  ;;  %p2607_p11 = pnand %p2138_p7, %p38_p9 }
  0x47   : > { %s219_s10 = sshll.u32 %s212_s9, 4  ;;  %s209_s28 = scalar_lea.sflag [#allocation5], %s208_s30  ;;  %s2605_s10 = int_to_ptr.vmem [resolvable:$true] %s219_s10 }
  0x48   : > { %s2299_s12 = scalar_lea.hbm %s2603_s8, 128  ;;  %p2301_p0 = pneg %p2607_p11 }
  0x49   : > { %p2300_p12 = scmp.ne.s32.totalorder %s2603_s8, %s2299_s12  ;;  %s2304_s17 = scalar_lea.hbm %s2874_s0, 256 }
  0x4a   : > { %p2305_p13 = scmp.lt.u32.totalorder %s2603_s8, %s2874_s0  ;;  %p2306_p6 = scmp.lt.u32.totalorder %s2304_s17, %s2299_s12 }
  0x4b   : > { %p2302_p2 = pnand %p2301_p0, %p2300_p12  ;;  %p2308_p3 = scmp.lt.u32.totalorder %s2299_s12, %s2603_s8 }
  0x4c   : > { %p2307_p10 = por %p2306_p6, %p2305_p13 }
  0x4d   : > { %p2303_p1 = pneg %p2302_p2 }
  0x4e   : > { %p2309_p7 = por %p2308_p3, %p2307_p10 }
  0x50   : > { %p2310_p9 = pnand %p2309_p7, %p2303_p1 }
  0x52   : > { %2313 = shalt.err (!%p2310_p9)
}
  0x53   : > { %s2314_s30 = scalar_lea.vmem %s2605_s10, 128  ;;  %s2405_s15 = smov [#allocation4]  }
  0x54   : > { %p2315_p12 = scmp.ne.s32.totalorder %s2605_s10, %s2314_s30  ;;  %s2319_s16 = sshll.u32 %s2405_s15, 4  ;;  %s2320_s16 = int_to_ptr.vmem [resolvable:$false] %s2319_s16 }
  0x55   : > { %s2321_s9 = scalar_lea.vmem %s2320_s16, 256  ;;  %p2322_p4 = scmp.lt.s32.totalorder %s2605_s10, %s2320_s16 }
  0x56   : > { %p2317_p2 = pnand %p2315_p12, %p2301_p0  ;;  %p2323_p13 = scmp.lt.s32.totalorder %s2321_s9, %s2314_s30 }
  0x58   : > { %p2318_p5 = pneg %p2317_p2  ;;  %p2324_p6 = por %p2323_p13, %p2322_p4 }
  0x5a   : > { %p2325_p10 = pnand %p2324_p6, %p2318_p5 }
  0x5c   : > { %2328 = shalt.err (!%p2325_p10)
}
  0x5d   : > { %2131 = dma.hbm_to_vmem [thread:$0]  (!%p2607_p11), %s2603_s8, 128, %s2605_s10, %s209_s28  }
  0x5e   : > { %228 = sbr.rel (%p2510_p8) target bundleno = 2115 (0x843), region = 40  ;;  %s2639_s12 = sand.u32 (!%p2510_p8), 1, %s2391_s19  }
  0x5f   : > { %s1917_s13 = sshll.u32 (!%p2510_p8), %s2639_s12, 3  ;;  %s231_s29 = scalar_lea.sflag (!%p2510_p8), [#allocation5], %s2639_s12 }
  0x60   : > { %s234_s17 = scalar_lea.vmem (!%p2510_p8), [#allocation4], %s1917_s13  ;;  %p2890_p4 = scmp.ne.s32.totalorder (!%p2510_p8), %s2883_s24, 0 }
  0x65   : > { %2374 = dma.done.wait (%p2890_p4), %s231_s29, 128  }
  0x66   : > { %2376 = vsyncadd (%p2890_p4), %s231_s29, 4294967168  ;;  %p2891_p5 = scmp.eq.s32.totalorder %s2491_s22, 0 }
  0x68   : > { %2378 = dma.done.wait (%p2891_p5), [#allocation8], 1024   ;;  %p2892_p8 = pmov %p2891_p5 }
  0x69   : > { %v2406_v0 = vmov 0.0|0.0   ;;  %vm2407_vm0 = vmmov 0   ;;  %v2408_v1 = vmov 0.0   ;;  %v270_v2 = vld [vmem:[#allocation7] sm:$0xff]  ;;  %v271_v3 = vld [vmem:[#allocation7 + $0x8] sm:$0xff]  ;;  %v272_v4 = vld [vmem:[#allocation7 + $0x10] sm:$0xff] }
  0x6a   : > { %2380 = vsyncadd (%p2892_p8), [#allocation8], 4294966272  ;;  %2097 = vmatprep.subr.bf16.mxu0 %v2406_v0  ;;  %2003 = vmatprep.mubr.msk.f32.mxu0 %vm2407_vm0, %v2408_v1  ;;  %v2098_v5 = vpack.c.bf16 %v271_v3, %v270_v2  ;;  %v273_v6 = vld [vmem:[#allocation7 + $0x18] sm:$0xff]  ;;  %vm281_vm1 = vcmask 261120   ;;  %v1921_v9 = vld [vmem:[%s2876_s2] ss:$0 sm:$0xff] }
  0x6b   : > { %2006 = vmatprep.subr.mxu1 %v2408_v1  ;;  %2008 = vmatprep.mubr.msk.f32.mxu1 %vm2407_vm0, %v2408_v1  ;;  %v2101_v7 = vpack.c.bf16 %v273_v6, %v272_v4  ;;  %v269_v8 = vld [vmem:[%s234_s17] sm:$0xff]  ;;  %vm355_vm2 = vcmask 785408   ;;  %s2409_s8 = smov 64   ;;  %s2410_s10 = smov 96   ;;  %vm361_vm3 = vcmask 31744   ;;  %vm436_vm4 = vcmask 64512  }
  0x6c   : > { %2099 = vmatpush3.bf16.msra.mxu0 %v2098_v5  ;;  %s2411_s11 = smov 92   ;;  %s2412_s28 = smov 124   ;;  %vm1709_vm5 = vcmask 97280   ;;  %vm1711_vm6 = vcmask 130048   ;;  %vm1713_vm7 = vcmask 162816   ;;  %vm1715_vm8 = vcmask 195584  }
  0x6d   : > { %2100 = vmatprep.subr.bf16.mxu0 %v2406_v0  ;;  %s2413_s7 = smov 88   ;;  %s2414_s6 = smov 120   ;;  %vm1717_vm9 = vcmask 228352  }
  0x6e   : > { %s2415_s30 = smov 116   ;;  %s2416_s15 = smov 84  }
  0x6f   : > { %s2417_s16 = smov 72   ;;  %s2418_s9 = smov 68  }
  0x70   : > { %2102 = vmatpush3.bf16.msra.mxu0 %v2101_v7  ;;  %s2419_s29 = smov 80   ;;  %s2420_s17 = smov 112  }
  0x71   : > { %2026 = vmatprep.subr.mxu0 %v2408_v1  ;;  %s2421_s24 = smov 76   ;;  %s2422_s26 = smov 108  }
  0x72   : > { %p2893_p0 = scmp.ne.s32.totalorder %s2888_s23, 0 }
  0x73   : > { %2004 = vmatmul.mubr.msk.f32.vlgmr.msra.gmra.mrb[0].mxu0 %vm281_vm1, %v269_v8 }
  0x74   : > { %2028 = vmatprep.mubr.msk.f32.mxu0 %vm2407_vm0, %v2408_v1 }
 0x146   : > { %v351_v10 = vpop.f32.mrb[0].mxu0 }
 0x147   : > { %v352_v11 = vadd.f32 %v1921_v9, %v351_v10  ;;  %v2005_v12 = vpop.f32.mrb[1].mxu0 }
 0x149   : > { %356 = vst.msk [vmem:[#allocation2] sm:$0xff] %vm355_vm2, %v352_v11 }
 0x150   : > { %v2667_v13 = vld [vmem:[#allocation2] sm:$0xff] }
 0x151   : > { %448 = vrot.lane.b32.xlu1 %v2667_v13, %s2409_s8  ;;  %359 = vrot.lane.b32.xlu0 %v2667_v13, %s2410_s10  ;;  %s2423_s8 = smov 104   ;;  %s2424_s10 = smov 100  }
 0x155   : > { %526 = vrot.lane.b32.xlu1 %v2667_v13, %s2411_s11  ;;  %s2425_s11 = smov 60  }
 0x159   : > { %524 = vrot.lane.b32.xlu1 %v2667_v13, %s2412_s28  ;;  %s2426_s28 = smov 52  }
 0x15d   : > { %691 = vrot.lane.b32.xlu1 %v2667_v13, %s2413_s7  ;;  %s2427_s7 = smov 48  }
 0x161   : > { %689 = vrot.lane.b32.xlu1 %v2667_v13, %s2414_s6  ;;  %s2428_s6 = smov 56  }
 0x165   : > { %854 = vrot.lane.b32.xlu1 %v2667_v13, %s2415_s30  ;;  %s2429_s30 = smov 40  }
 0x1c3   : > { %v449_v14 = vpop.permute.xlu1 %448  ;;  %v360_v15 = vpop.permute.xlu0 %359 }
 0x1c4   : > { %2007 = vmatpush3.xpose.msk.msra.mxu1 %vm361_vm3, %v360_v15 }
 0x1c5   : > { %2011 = vmatprep.subr.mxu1 %v2408_v1 }
 0x1c7   : > { %v2678_v16 = vpop.permute.xlu1 %526  ;;  %2009 = vmatmul.mubr.msk.f32.vlgmr.msra.gmra.mrb[0].mxu1 %vm361_vm3, %v2667_v13 }
 0x1c8   : > { %2012 = vmatpush3.msra.mxu1 %v449_v14  ;;  %2013 = vmatprep.mubr.msk.f32.mxu1 %vm2407_vm0, %v2408_v1 }
 0x1c9   : > { %2016 = vmatprep.subr.mxu1 %v2408_v1 }
 0x1cb   : > { %v2685_v17 = vpop.permute.xlu1 %524 }
 0x1cf   : > { %v692_v18 = vpop.permute.xlu1 %691 }
 0x1d0   : > { %2027 = vmatpush3.xpose.msk.msra.mxu0 %vm361_vm3, %v692_v18 }
 0x1d1   : > { %2036 = vmatprep.subr.mxu0 %v2408_v1 }
 0x1d3   : > { %v690_v19 = vpop.permute.xlu1 %689 }
 0x1d4   : > { %2029 = vmatmul.mubr.msk.f32.vlgmr.msra.gmra.mrb[2].mxu0 %vm361_vm3, %v690_v19 }
 0x1d5   : > { %2038 = vmatprep.mubr.msk.f32.mxu0 %vm2407_vm0, %v2408_v1 }
 0x1d7   : > { %v855_v29 = vpop.permute.xlu1 %854 }
 0x29a   : > { %v432_v20 = vpop.f32.mrb[0].mxu1 }
 0x29b   : > { %v2010_v21 = vpop.f32.mrb[1].mxu1  ;;  %v437_v22 = vsel %vm436_vm4, %v432_v20, -inf }
 0x29c   : > { %438 = vmax.xlane.f32.xlu0 %v437_v22 }
 0x2a7   : > { %v2693_v23 = vpop.f32.mrb[2].mxu0 }
 0x2a8   : > { %v2030_v24 = vpop.f32.mrb[3].mxu0  ;;  %v767_v32 = vsel %vm436_vm4, %v2693_v23, -inf }
 0x2b2   : > { %856 = vrot.lane.b32.xlu0 %v2667_v13, %s2416_s15  ;;  %s2430_s15 = smov 44  }
 0x2b6   : > { %1351 = vrot.lane.b32.xlu0 %v2667_v13, %s2417_s16  ;;  %s2431_s16 = smov 36  }
 0x2ba   : > { %1516 = vrot.lane.b32.xlu0 %v2667_v13, %s2418_s9  ;;  %s2432_s9 = smov 4  }
 0x329   : > { %v439_v25 = vpop.xlane.xlu0 %438 }
 0x32a   : > { %v440_v26 = vsub.f32 %v432_v20, %v439_v25 }
 0x32c   : > { %v441_v27 = vmul.f32 1.442695, %v440_v26 }
 0x32d   : > { %v857_v28 = vpop.permute.xlu0 %856 }
 0x32e   : > { %2211 = vpow2.f32 %v441_v27  ;;  %2037 = vmatpush3.xpose.msk.msra.mxu0 %vm361_vm3, %v857_v28 }
 0x32f   : > { %2046 = vmatprep.subr.mxu0 %v2408_v1 }
 0x331   : > { %2039 = vmatmul.mubr.msk.f32.vlgmr.msra.gmra.mrb[4].mxu0 %vm361_vm3, %v855_v29  ;;  %v1352_v39 = vpop.permute.xlu0 %1351 }
 0x332   : > { %2048 = vmatprep.mubr.msk.f32.mxu0 %vm2407_vm0, %v2408_v1 }
 0x335   : > { %v1517_v42 = vpop.permute.xlu0 %1516 }
 0x338   : > { %v2212_v30 = vpop.eup %2211 }
 0x339   : > { %v443_v31 = vsel %vm436_vm4, %v2212_v30, 0.0 }
 0x33a   : > { %444 = vadd.xlane.f32.xlu1 %v443_v31 }
 0x34b   : > { %1021 = vrot.lane.b32.xlu1 %v2667_v13, %s2419_s29  ;;  %s2433_s29 = smov 8  }
 0x34f   : > { %1019 = vrot.lane.b32.xlu1 %v2667_v13, %s2420_s17  ;;  %s2434_s17 = smov 12  }
 0x353   : > { %1186 = vrot.lane.b32.xlu1 %v2667_v13, %s2421_s24  ;;  %s2435_s24 = smov 16  }
 0x357   : > { %1184 = vrot.lane.b32.xlu1 %v2667_v13, %s2422_s26  ;;  %s2436_s26 = smov 20  }
 0x35b   : > { %1349 = vrot.lane.b32.xlu1 %v2667_v13, %s2423_s8  ;;  %s2437_s8 = smov 24  }
 0x35f   : > { %1514 = vrot.lane.b32.xlu1 %v2667_v13, %s2424_s10  ;;  %s2438_s10 = smov 28  }
 0x383   : > { %768 = vmax.xlane.f32.xlu1 %v767_v32 }
 0x3c7   : > { %v445_v33 = vpop.xlane.xlu1 %444 }
 0x3c8   : > { %2213 = vrcp.f32 %v445_v33 }
 0x3cb   : > { %v1022_v34 = vpop.permute.xlu1 %1021 }
 0x3cc   : > { %2047 = vmatpush3.xpose.msk.msra.mxu0 %vm361_vm3, %v1022_v34 }
 0x3cd   : > { %2056 = vmatprep.subr.mxu0 %v2408_v1 }
 0x3cf   : > { %v1020_v35 = vpop.permute.xlu1 %1019 }
 0x3d0   : > { %2049 = vmatmul.mubr.msk.f32.vlgmr.msra.gmra.mrb[6].mxu0 %vm361_vm3, %v1020_v35 }
 0x3d1   : > { %2058 = vmatprep.mubr.msk.f32.mxu0 %vm2407_vm0, %v2408_v1 }
 0x3d2   : > { %v2214_v36 = vpop.eup %2213 }
 0x3d3   : > { %v447_v37 = vmul.f32 %v2214_v36, %v2212_v30  ;;  %v1187_v38 = vpop.permute.xlu1 %1186 }
 0x3d4   : > { %2057 = vmatpush3.xpose.msk.msra.mxu0 %vm361_vm3, %v1187_v38 }
 0x3d5   : > { %2014 = vmatmul.mubr.msk.f32.vlgmr.msra.gmra.mrb[2].mxu1 %vm436_vm4, %v447_v37  ;;  %2066 = vmatprep.subr.mxu0 %v2408_v1 }
 0x3d6   : > { %2017 = vmatpush3.xpose.msk.msra.mxu1 %vm361_vm3, %v2678_v16  ;;  %2018 = vmatprep.mubr.msk.f32.mxu1 %vm2407_vm0, %v2408_v1 }
 0x3d7   : > { %v1185_v40 = vpop.permute.xlu1 %1184  ;;  %2021 = vmatprep.subr.mxu1 %v2408_v1 }
 0x3d8   : > { %2059 = vmatmul.mubr.msk.f32.vlgmr.msra.gmra.mrb[8].mxu0 %vm361_vm3, %v1185_v40 }
 0x3d9   : > { %2067 = vmatpush3.xpose.msk.msra.mxu0 %vm361_vm3, %v1352_v39  ;;  %2019 = vmatmul.mubr.msk.f32.vlgmr.msra.gmra.mrb[4].mxu1 %vm361_vm3, %v2685_v17 }
 0x3da   : > { %2068 = vmatprep.mubr.msk.f32.mxu0 %vm2407_vm0, %v2408_v1  ;;  %2076 = vmatprep.subr.mxu0 %v2408_v1 }
 0x3db   : > { %v1350_v41 = vpop.permute.xlu1 %1349  ;;  %2023 = vmatprep.mubr.msk.f32.mxu1 %vm2407_vm0, %v2408_v1 }
 0x3dc   : > { %2069 = vmatmul.mubr.msk.f32.vlgmr.msra.gmra.mrb[10].mxu0 %vm361_vm3, %v1350_v41 }
 0x3dd   : > { %2077 = vmatpush3.xpose.msk.msra.mxu0 %vm361_vm3, %v1517_v42  ;;  %2078 = vmatprep.mubr.msk.f32.mxu0 %vm2407_vm0, %v2408_v1 }
 0x3de   : > { %2103 = vmatprep.subr.bf16.mxu0 %v2406_v0 }
 0x3df   : > { %v1515_v43 = vpop.permute.xlu1 %1514 }
 0x3e0   : > { %2079 = vmatmul.mubr.msk.f32.vlgmr.msra.gmra.mrb[12].mxu0 %vm361_vm3, %v1515_v43 }
 0x3e1   : > { %2094 = vmatprep.mubr.msk.f32.mxu0 %vm2407_vm0, %v2408_v1 }
 0x404   : > { %v928_v44 = vpop.f32.mrb[4].mxu0 }
 0x405   : > { %v2040_v45 = vpop.f32.mrb[5].mxu0  ;;  %v932_v61 = vsel %vm436_vm4, %v928_v44, -inf }
 0x410   : > { %v769_v46 = vpop.xlane.xlu1 %768 }
 0x411   : > { %v770_v47 = vsub.f32 %v2693_v23, %v769_v46 }
 0x413   : > { %v771_v50 = vmul.f32 1.442695, %v770_v47 }
 0x415   : > { %2215 = vpow2.f32 %v771_v50 }
 0x41f   : > { %v2749_v3 = vpop.eup %2215 }
 0x420   : > { %v773_v5 = vsel %vm436_vm4, %v2749_v3, 0.0 }
 0x4a3   : > { %v1093_v48 = vpop.f32.mrb[6].mxu0 }
 0x4a4   : > { %v2050_v49 = vpop.f32.mrb[7].mxu0  ;;  %v1097_v4 = vsel %vm436_vm4, %v1093_v48, -inf }
 0x4a8   : > { %v2743_v51 = vpop.f32.mrb[2].mxu1 }
 0x4a9   : > { %v2015_v52 = vpop.f32.mrb[3].mxu1 }
 0x4ab   : > { %v1258_v53 = vpop.f32.mrb[8].mxu0 }
 0x4ac   : > { %v598_v54 = vpop.f32.mrb[4].mxu1  ;;  %v2060_v55 = vpop.f32.mrb[9].mxu0  ;;  %v1262_v56 = vsel %vm436_vm4, %v1258_v53, -inf }
 0x4ad   : > { %v2020_v57 = vpop.f32.mrb[5].mxu1  ;;  %1263 = vmax.xlane.f32.xlu1 %v1262_v56  ;;  %v602_v58 = vsel %vm436_vm4, %v598_v54, -inf }
 0x4ae   : > { %603 = vmax.xlane.f32.xlu0 %v602_v58 }
 0x4af   : > { %v1423_v59 = vpop.f32.mrb[10].mxu0 }
 0x4b0   : > { %v2070_v60 = vpop.f32.mrb[11].mxu0  ;;  %v1427_v6 = vsel %vm436_vm4, %v1423_v59, -inf }
 0x4b2   : > { %933 = vmax.xlane.f32.xlu0 %v932_v61 }
 0x4b3   : > { %v1588_v62 = vpop.f32.mrb[12].mxu0 }
 0x4b4   : > { %v2080_v63 = vpop.f32.mrb[13].mxu0  ;;  %v1592_v2 = vsel %vm436_vm4, %v1588_v62, -inf }
 0x4b5   : > { %1593 = vmax.xlane.f32.xlu1 %v1592_v2 }
 0x4b6   : > { %1098 = vmax.xlane.f32.xlu0 %v1097_v4 }
 0x4b9   : > { %774 = vadd.xlane.f32.xlu1 %v773_v5 }
 0x4ba   : > { %1428 = vmax.xlane.f32.xlu0 %v1427_v6 }
 0x53a   : > { %v1264_v7 = vpop.xlane.xlu1 %1263 }
 0x53b   : > { %v604_v8 = vpop.xlane.xlu0 %603  ;;  %v1265_v9 = vsub.f32 %v1258_v53, %v1264_v7 }
 0x53c   : > { %v605_v19 = vsub.f32 %v598_v54, %v604_v8 }
 0x53d   : > { %v1266_v12 = vmul.f32 1.442695, %v1265_v9 }
 0x53e   : > { %v606_v24 = vmul.f32 1.442695, %v605_v19 }
 0x53f   : > { %v934_v10 = vpop.xlane.xlu0 %933 }
 0x540   : > { %v935_v11 = vsub.f32 %v928_v44, %v934_v10 }
 0x542   : > { %v936_v14 = vmul.f32 1.442695, %v935_v11  ;;  %v1594_v15 = vpop.xlane.xlu1 %1593  ;;  %v1721_v11 = vld [vmem:[#allocation9] sm:$0xff] }
 0x543   : > { %v1595_v16 = vsub.f32 %v1588_v62, %v1594_v15  ;;  %v1099_v17 = vpop.xlane.xlu0 %1098 }
 0x544   : > { %2217 = vpow2.f32 %v936_v14  ;;  %v1100_v18 = vsub.f32 %v1093_v48, %v1099_v17  ;;  %v1723_v14 = vld [vmem:[#allocation9 + $0x10] sm:$0xff] }
 0x545   : > { %2219 = vpow2.f32 %v1266_v12  ;;  %v1596_v20 = vmul.f32 1.442695, %v1595_v16  ;;  %v1722_v12 = vld [vmem:[#allocation9 + $0x8] sm:$0xff]  ;;  %v1724_v16 = vld [vmem:[#allocation9 + $0x18] sm:$0xff] }
 0x546   : > { %v1101_v21 = vmul.f32 1.442695, %v1100_v18  ;;  %v775_v38 = vpop.xlane.xlu1 %774  ;;  %v2104_v15 = vpack.c.bf16 %v1722_v12, %v1721_v11  ;;  %v2107_v18 = vpack.c.bf16 %v1724_v16, %v1723_v14 }
 0x547   : > { %v1429_v22 = vpop.xlane.xlu0 %1428 }
 0x548   : > { %2221 = vpow2.f32 %v1101_v21  ;;  %v1430_v23 = vsub.f32 %v1423_v59, %v1429_v22  ;;  %2105 = vmatpush3.bf16.msra.mxu0 %v2104_v15 }
 0x549   : > { %2223 = vpow2.f32 %v1596_v20  ;;  %2106 = vmatprep.subr.bf16.mxu0 %v2406_v0 }
 0x54a   : > { %v1431_v25 = vmul.f32 1.442695, %v1430_v23 }
 0x54c   : > { %2225 = vpow2.f32 %v1431_v25  ;;  %2108 = vmatpush3.bf16.msra.mxu0 %v2107_v18 }
 0x54d   : > { %2227 = vpow2.f32 %v606_v24 }
 0x54e   : > { %v2755_v26 = vpop.eup %2217 }
 0x54f   : > { %v938_v27 = vsel %vm436_vm4, %v2755_v26, 0.0  ;;  %v2759_v28 = vpop.eup %2219 }
 0x550   : > { %939 = vadd.xlane.f32.xlu0 %v938_v27  ;;  %v1268_v30 = vsel %vm436_vm4, %v2759_v28, 0.0 }
 0x552   : > { %v2761_v29 = vpop.eup %2221 }
 0x553   : > { %v1103_v31 = vsel %vm436_vm4, %v2761_v29, 0.0  ;;  %v2767_v32 = vpop.eup %2223 }
 0x554   : > { %1269 = vadd.xlane.f32.xlu0 %v1268_v30  ;;  %1104 = vadd.xlane.f32.xlu1 %v1103_v31  ;;  %v1598_v35 = vsel %vm436_vm4, %v2767_v32, 0.0 }
 0x556   : > { %v2769_v33 = vpop.eup %2225 }
 0x557   : > { %v1433_v34 = vsel %vm436_vm4, %v2769_v33, 0.0  ;;  %v2228_v36 = vpop.eup %2227 }
 0x558   : > { %1434 = vadd.xlane.f32.xlu1 %v1433_v34  ;;  %1599 = vadd.xlane.f32.xlu0 %v1598_v35  ;;  %v608_v37 = vsel %vm436_vm4, %v2228_v36, 0.0 }
 0x55c   : > { %609 = vadd.xlane.f32.xlu0 %v608_v37  ;;  %v1947_v37 = vld [vmem:[%s2878_s4] ss:$0 sm:$0xff] }
 0x569   : > { %613 = vrot.lane.b32.xlu1 %v2667_v13, %s2425_s11 }
 0x56d   : > { %943 = vrot.lane.b32.xlu1 %v2667_v13, %s2426_s28 }
 0x571   : > { %1108 = vrot.lane.b32.xlu1 %v2667_v13, %s2427_s7  ;;  %s1950_s7 = sshll.u32 %s2491_s22, 7 }
 0x572   : > { %778 = vrot.lane.b32.xlu0 %v2667_v13, %s2428_s6  ;;  %s268_s6 = scalar_lea.vmem [#allocation10], %s1917_s13  ;;  %s2439_s13 = smov [#allocation10]  }
 0x575   : > { %1438 = vrot.lane.b32.xlu1 %v2667_v13, %s2429_s30  ;;  %s1820_s30 = sshll.u32 %s268_s6, 4  ;;  %s2831_s30 = int_to_ptr.vmem [resolvable:$true] %s1820_s30 }
 0x576   : > { %1273 = vrot.lane.b32.xlu0 %v2667_v13, %s2430_s15  ;;  %s2329_s22 = scalar_lea.vmem %s2831_s30, 128 }
 0x577   : > { %p2330_p11 = scmp.ne.s32.totalorder %s2831_s30, %s2329_s22 }
 0x579   : > { %p2331_p1 = pnand %p2330_p11, %p2893_p0 }
 0x57a   : > { %1603 = vrot.lane.b32.xlu0 %v2667_v13, %s2431_s16 }
 0x57b   : > { %p2332_p3 = pneg %p2331_p1 }
 0x5dd   : > { %v940_v39 = vpop.xlane.xlu0 %939 }
 0x5e1   : > { %v1270_v40 = vpop.xlane.xlu0 %1269  ;;  %v1105_v41 = vpop.xlane.xlu1 %1104 }
 0x5e5   : > { %v1600_v42 = vpop.xlane.xlu0 %1599  ;;  %v1435_v43 = vpop.xlane.xlu1 %1434 }
 0x5e9   : > { %v610_v44 = vpop.xlane.xlu0 %609  ;;  %v614_v45 = vpop.permute.xlu1 %613 }
 0x5ea   : > { %2229 = vrcp.f32 %v610_v44  ;;  %2022 = vmatpush3.msra.mxu1 %v614_v45 }
 0x5eb   : > { %2031 = vmatprep.subr.mxu1 %v2408_v1  ;;  %2231 = vrcp.f32 %v775_v38 }
 0x5ec   : > { %2233 = vrcp.f32 %v940_v39 }
 0x5ed   : > { %2235 = vrcp.f32 %v1105_v41  ;;  %v779_v49 = vpop.permute.xlu0 %778  ;;  %v944_v50 = vpop.permute.xlu1 %943 }
 0x5ee   : > { %2237 = vrcp.f32 %v1270_v40 }
 0x5ef   : > { %2239 = vrcp.f32 %v1435_v43 }
 0x5f0   : > { %2241 = vrcp.f32 %v1600_v42 }
 0x5f1   : > { %v1109_v55 = vpop.permute.xlu1 %1108  ;;  %v1274_v58 = vpop.permute.xlu0 %1273 }
 0x5f4   : > { %v2230_v46 = vpop.eup %2229 }
 0x5f5   : > { %v612_v47 = vmul.f32 %v2230_v46, %v2228_v36  ;;  %v2232_v48 = vpop.eup %2231  ;;  %v1439_v61 = vpop.permute.xlu1 %1438 }
 0x5f6   : > { %v777_v13 = vmul.f32 %v2232_v48, %v2749_v3  ;;  %v2234_v52 = vpop.eup %2233  ;;  %v1604_v2 = vpop.permute.xlu0 %1603 }
 0x5f7   : > { %2024 = vmatmul.mubr.msk.f32.vlgmr.msra.gmra.mrb[6].mxu1 %vm436_vm4, %v612_v47  ;;  %v942_v53 = vmul.f32 %v2234_v52, %v2755_v26  ;;  %v2236_v54 = vpop.eup %2235 }
 0x5f8   : > { %2032 = vmatpush3.msra.mxu1 %v779_v49  ;;  %2033 = vmatprep.mubr.msk.f32.mxu1 %vm2407_vm0, %v2408_v1  ;;  %v1107_v56 = vmul.f32 %v2236_v54, %v2761_v29  ;;  %v2238_v57 = vpop.eup %2237 }
 0x5f9   : > { %2041 = vmatprep.subr.mxu1 %v2408_v1  ;;  %v1272_v59 = vmul.f32 %v2238_v57, %v2759_v28  ;;  %v2240_v60 = vpop.eup %2239 }
 0x5fa   : > { %v1437_v62 = vmul.f32 %v2240_v60, %v2769_v33  ;;  %v2242_v63 = vpop.eup %2241 }
 0x5fb   : > { %2034 = vmatmul.mubr.msk.f32.vlgmr.msra.gmra.mrb[8].mxu1 %vm436_vm4, %v777_v13  ;;  %v1602_v3 = vmul.f32 %v2242_v63, %v2767_v32 }
 0x5fc   : > { %2042 = vmatpush3.msra.mxu1 %v944_v50  ;;  %2043 = vmatprep.mubr.msk.f32.mxu1 %vm2407_vm0, %v2408_v1 }
 0x5fd   : > { %2051 = vmatprep.subr.mxu1 %v2408_v1 }
 0x5ff   : > { %2044 = vmatmul.mubr.msk.f32.vlgmr.msra.gmra.mrb[10].mxu1 %vm436_vm4, %v942_v53 }
 0x600   : > { %2052 = vmatpush3.msra.mxu1 %v1109_v55  ;;  %2053 = vmatprep.mubr.msk.f32.mxu1 %vm2407_vm0, %v2408_v1 }
 0x601   : > { %2061 = vmatprep.subr.mxu1 %v2408_v1 }
 0x603   : > { %2054 = vmatmul.mubr.msk.f32.vlgmr.msra.gmra.mrb[12].mxu1 %vm436_vm4, %v1107_v56 }
 0x604   : > { %2062 = vmatpush3.msra.mxu1 %v1274_v58  ;;  %2063 = vmatprep.mubr.msk.f32.mxu1 %vm2407_vm0, %v2408_v1 }
 0x605   : > { %2071 = vmatprep.subr.mxu1 %v2408_v1 }
 0x607   : > { %2064 = vmatmul.mubr.msk.f32.vlgmr.msra.gmra.mrb[14].mxu1 %vm436_vm4, %v1272_v59 }
 0x608   : > { %2072 = vmatpush3.msra.mxu1 %v1439_v61  ;;  %2073 = vmatprep.mubr.msk.f32.mxu1 %vm2407_vm0, %v2408_v1 }
 0x609   : > { %2081 = vmatprep.subr.mxu1 %v2408_v1 }
 0x60b   : > { %2074 = vmatmul.mubr.msk.f32.vlgmr.msra.gmra.mrb[16].mxu1 %vm436_vm4, %v1437_v62 }
 0x60c   : > { %2082 = vmatpush3.msra.mxu1 %v1604_v2  ;;  %2083 = vmatprep.mubr.msk.f32.mxu1 %vm2407_vm0, %v2408_v1 }
 0x60f   : > { %2084 = vmatmul.mubr.msk.f32.vlgmr.msra.gmra.mrb[18].mxu1 %vm436_vm4, %v1602_v3 }
 0x6ca   : > { %v685_v4 = vpop.f32.mrb[6].mxu1 }
 0x6cb   : > { %1680 = vrot.lane.b32.xlu1 %v685_v4, %s2432_s9  ;;  %v2025_v5 = vpop.f32.mrb[7].mxu1  ;;  %s2829_s9 = scalar_lea.hbm %s2879_s5, %s1950_s7 }
 0x6ce   : > { %v850_v6 = vpop.f32.mrb[8].mxu1 }
 0x6cf   : > { %1684 = vrot.lane.b32.xlu0 %v850_v6, %s2433_s29  ;;  %v2035_v7 = vpop.f32.mrb[9].mxu1  ;;  %s1807_s29 = scalar_lea.sflag [#allocation6], %s2639_s12 }
 0x6d2   : > { %v1015_v8 = vpop.f32.mrb[10].mxu1 }
 0x6d3   : > { %1688 = vrot.lane.b32.xlu1 %v1015_v8, %s2434_s17  ;;  %v2045_v9 = vpop.f32.mrb[11].mxu1  ;;  %s2333_s17 = sshll.u32 %s2439_s13, 4  ;;  %s2334_s17 = int_to_ptr.vmem [resolvable:$false] %s2333_s17 }
 0x6d4   : > { %p2336_p7 = scmp.lt.s32.totalorder %s2831_s30, %s2334_s17 }
 0x6d6   : > { %v1180_v10 = vpop.f32.mrb[12].mxu1 }
 0x6d7   : > { %1692 = vrot.lane.b32.xlu0 %v1180_v10, %s2435_s24  ;;  %v2055_v1 = vpop.f32.mrb[13].mxu1  ;;  %s2335_s24 = scalar_lea.vmem %s2334_s17, 256 }
 0x6d8   : > { %p2337_p9 = scmp.lt.s32.totalorder %s2335_s24, %s2329_s22 }
 0x6da   : > { %v1345_v17 = vpop.f32.mrb[14].mxu1  ;;  %p2338_p12 = por %p2337_p9, %p2336_p7 }
 0x6db   : > { %1696 = vrot.lane.b32.xlu1 %v1345_v17, %s2436_s26  ;;  %v2065_v19 = vpop.f32.mrb[15].mxu1 }
 0x6dc   : > { %p2339_p2 = pnand %p2338_p12, %p2332_p3 }
 0x6de   : > { %v1510_v20 = vpop.f32.mrb[16].mxu1 }
 0x6df   : > { %1700 = vrot.lane.b32.xlu0 %v1510_v20, %s2437_s8  ;;  %v2075_v21 = vpop.f32.mrb[17].mxu1 }
 0x6e2   : > { %v1675_v22 = vpop.f32.mrb[18].mxu1 }
 0x6e3   : > { %1704 = vrot.lane.b32.xlu1 %v1675_v22, %s2438_s10  ;;  %v2085_v23 = vpop.f32.mrb[19].mxu1 }
 0x73d   : > { %v1681_v24 = vpop.permute.xlu1 %1680 }
 0x73e   : > { %v1707_v28 = vsel %vm361_vm3, %v2743_v51, %v1681_v24 }
 0x741   : > { %v1685_v25 = vpop.permute.xlu0 %1684 }
 0x742   : > { %v1708_v0 = vsel %vm436_vm4, %v1707_v28, %v1685_v25 }
 0x745   : > { %v1689_v26 = vpop.permute.xlu1 %1688 }
 0x746   : > { %v1710_v30 = vsel %vm1709_vm5, %v1708_v0, %v1689_v26 }
 0x749   : > { %v1693_v27 = vpop.permute.xlu0 %1692 }
 0x74a   : > { %v1712_v32 = vsel %vm1711_vm6, %v1710_v30, %v1693_v27 }
 0x74d   : > { %v1697_v29 = vpop.permute.xlu1 %1696 }
 0x74e   : > { %v1714_v33 = vsel %vm1713_vm7, %v1712_v32, %v1697_v29 }
 0x751   : > { %v1701_v31 = vpop.permute.xlu0 %1700 }
 0x752   : > { %v1716_v34 = vsel %vm1715_vm8, %v1714_v33, %v1701_v31 }
 0x755   : > { %v1705_v35 = vpop.permute.xlu1 %1704 }
 0x756   : > { %v1718_v36 = vsel %vm1717_vm9, %v1716_v34, %v1705_v35 }
 0x757   : > { %1719 = vst.msk [vmem:[#allocation3] sm:$0xff] %vm281_vm1, %v1718_v36 }
 0x75e   : > { %v1720_v51 = vld [vmem:[#allocation3] sm:$0xff] }
 0x75f   : > { %2095 = vmatmul.mubr.msk.f32.vlgmr.msra.gmra.mrb[14].mxu0 %vm281_vm1, %v1720_v51 }
 0x832   : > { %v1801_v38 = vpop.f32.mrb[14].mxu0 }
 0x833   : > { %v1802_v39 = vadd.f32 %v1947_v37, %v1801_v38  ;;  %v2096_v40 = vpop.f32.mrb[15].mxu0 }
 0x835   : > { %1805 = vst.msk [vmem:[%s268_s6] sm:$0xff] %vm281_vm1, %v1802_v39 }
 0x836   : > { %2342 = shalt.err (!%p2339_p2)
}
 0x837   : > { %s2343_s12 = scalar_lea.hbm %s2829_s9, 128  ;;  %s2347_s10 = scalar_lea.hbm %s2879_s5, 256 }
 0x838   : > { %p2344_p13 = scmp.ne.s32.totalorder %s2829_s9, %s2343_s12  ;;  %p2348_p4 = scmp.lt.u32.totalorder %s2829_s9, %s2879_s5 }
 0x839   : > { %p2349_p5 = scmp.lt.u32.totalorder %s2347_s10, %s2343_s12  ;;  %p2351_p11 = scmp.lt.u32.totalorder %s2343_s12, %s2829_s9 }
 0x83a   : > { %p2345_p6 = pnand %p2344_p13, %p2893_p0 }
 0x83b   : > { %p2350_p8 = por %p2349_p5, %p2348_p4 }
 0x83c   : > { %p2346_p10 = pneg %p2345_p6 }
 0x83d   : > { %p2352_p1 = por %p2351_p11, %p2350_p8 }
 0x83f   : > { %p2353_p3 = pnand %p2352_p1, %p2346_p10 }
 0x841   : > { %2356 = shalt.err (!%p2353_p3)
}
 0x842   : > { %2119 = dma.vmem_to_hbm [thread:$0]  (%p2893_p0), %s2831_s30, 128, %s2829_s9, %s1807_s29  }
 0x843 PF: > { %s1832_s7 = sand.u32 1, %s2387_s18   ;;  %p2894_p7 = scmp.ne.s32.totalorder %s2884_s25, 0 }
 0x844   : > { %p2895_p9 = scmp.ge.s32.totalorder %s2399_s21, 2  ;;  %s1833_s6 = scalar_lea.sflag [#allocation6], %s1832_s7 }
 0x846   : > { %p2133_p12 = pnand %p2895_p9, %p2894_p7 }
 0x848   : > { %2382 = dma.done.wait (!%p2133_p12), %s1833_s6, 128  }
 0x849   : > { %2384 = vsyncadd (!%p2133_p12), %s1833_s6, 4294967168  ;;  %p19_p2 = scmp.ge.s32.totalorder %s2580_s14, 4   ;;  %s2896_s18 = smov %s2391_s19 }
 0x84a   : > { %s2897_s19 = smov %s2395_s20  ;;  %s2898_s20 = smov %s2596_s27 }
 0x84b   : > { %s2899_s21 = smov %s2580_s14  ;;  %21 = sbr.rel (!%p19_p2) target bundleno = 6 (0x6), region = 93 }
 0x852   :  { %1838 = vsyncpa [#allocation5], 1 }
 0x853   :  { %1840 = vsyncpa [#allocation5 + $0x1], 1 }
 0x854   :  { %1841 = vsyncpa [#allocation8], 1 }
 0x855   :  { %1842 = vsyncpa [#allocation6], 1 }
 0x856   :  { %1844 = vsyncpa [#allocation6 + $0x1], 1 }

</bundles_post_ra>
